<compile_context>
chip_gen: v7x
topology: tpu7x:2x2x1
jax: 0.10.0
libtpu: 0.0.40
codegen_flags: <defaults>
</compile_context>

<pallas_src>
import functools

import numpy as np
import jax
import jax.numpy as jnp
from jax.experimental import pallas as pl
from jax.experimental.pallas import tpu as pltpu


# ----------------------------------------------------------------------------
# tiling helpers
# ----------------------------------------------------------------------------
def _round_up(x, m):
    return ((x + m - 1) // m) * m


def _pick_tile(n, target, *, min_steps=1):
    """Largest multiple-of-128 divisor of n (n % 128 == 0) that is
    <= min(target, n // min_steps).  min_steps=2 keeps >=2 grid steps on a
    'parallel' axis so v7x's two TensorCores both get work."""
    cap = min(target, n)
    if min_steps > 1:
        cap = min(cap, max(128, n // min_steps))
    cap = max(cap, 128)
    best = 128
    for t in range(128, cap + 1, 128):
        if n % t == 0:
            best = t
    return best


# ----------------------------------------------------------------------------
# kernel 1: feature transform   out[i-tile] = X[i-tile] @ W      (D, H tiny)
# ----------------------------------------------------------------------------
def _xw_kernel(x_ref, w_ref, o_ref):
    o_ref[...] = jnp.dot(x_ref[...], w_ref[...],
                         preferred_element_type=jnp.float32).astype(o_ref.dtype)


def _feature_transform(x, w, *, tm, out_dtype):
    n, d = x.shape
    h = w.shape[1]
    return pl.pallas_call(
        _xw_kernel,
        out_shape=jax.ShapeDtypeStruct((n, h), out_dtype),
        grid=(n // tm,),
        in_specs=[
            pl.BlockSpec((tm, d), lambda i: (i, 0)),
            pl.BlockSpec((d, h), lambda i: (0, 0)),
        ],
        out_specs=pl.BlockSpec((tm, h), lambda i: (i, 0)),
        compiler_params=pltpu.CompilerParams(dimension_semantics=("parallel",)),
    )(x, w)


# ----------------------------------------------------------------------------
# kernel 2: fused propagate   out[i-tile] = relu(adj[i-tile, :] @ M) @ W2
#           K-tiled over adj columns; f32 VMEM accumulator.
# ----------------------------------------------------------------------------
def _prop_fused_kernel(adj_ref, m_ref, w2_ref, o_ref, acc_ref, *, compute_dtype):
    k = pl.program_id(1)

    @pl.when(k == 0)
    def _():
        acc_ref[...] = jnp.zeros_like(acc_ref)

    a = adj_ref[...].astype(compute_dtype)          # bf16 adj -> compute dtype (exact)
    acc_ref[...] += jnp.dot(a, m_ref[...], preferred_element_type=jnp.float32)

    @pl.when(k == pl.num_programs(1) - 1)
    def _():
        h = jnp.maximum(acc_ref[...], 0.0).astype(compute_dtype)
        o_ref[...] = jnp.dot(h, w2_ref[...],
                             preferred_element_type=jnp.float32).astype(o_ref.dtype)


def _propagate_fused(adj, m, w2, *, tm, tk, compute_dtype, out_dtype):
    n = adj.shape[0]
    h = m.shape[1]
    h2 = w2.shape[1]
    return pl.pallas_call(
        functools.partial(_prop_fused_kernel, compute_dtype=compute_dtype),
        out_shape=jax.ShapeDtypeStruct((n, h2), out_dtype),
        grid=(n // tm, n // tk),                    # reduction (K) axis last
        in_specs=[
            pl.BlockSpec((tm, tk), lambda i, k: (i, k)),   # streamed adj tile
            pl.BlockSpec((tk, h), lambda i, k: (k, 0)),    # streamed operand tile
            pl.BlockSpec((h, h2), lambda i, k: (0, 0)),    # tiny resident W2
        ],
        out_specs=pl.BlockSpec((tm, h2), lambda i, k: (i, 0)),   # resident across k
        scratch_shapes=[pltpu.VMEM((tm, h), jnp.float32)],
        compiler_params=pltpu.CompilerParams(
            dimension_semantics=("parallel", "arbitrary")),
    )(adj, m, w2)


# ----------------------------------------------------------------------------
# kernel 3: propagate   out[i-tile] = adj[i-tile, :] @ M   (no activation)
# ----------------------------------------------------------------------------
def _prop_kernel(adj_ref, m_ref, o_ref, acc_ref, *, compute_dtype):
    k = pl.program_id(1)

    @pl.when(k == 0)
    def _():
        acc_ref[...] = jnp.zeros_like(acc_ref)

    a = adj_ref[...].astype(compute_dtype)
    acc_ref[...] += jnp.dot(a, m_ref[...], preferred_element_type=jnp.float32)

    @pl.when(k == pl.num_programs(1) - 1)
    def _():
        o_ref[...] = acc_ref[...].astype(o_ref.dtype)


def _propagate(adj, m, *, tm, tk, compute_dtype, out_dtype):
    n = adj.shape[0]
    h = m.shape[1]
    return pl.pallas_call(
        functools.partial(_prop_kernel, compute_dtype=compute_dtype),
        out_shape=jax.ShapeDtypeStruct((n, h), out_dtype),
        grid=(n // tm, n // tk),
        in_specs=[
            pl.BlockSpec((tm, tk), lambda i, k: (i, k)),
            pl.BlockSpec((tk, h), lambda i, k: (k, 0)),
        ],
        out_specs=pl.BlockSpec((tm, h), lambda i, k: (i, 0)),
        scratch_shapes=[pltpu.VMEM((tm, h), jnp.float32)],
        compiler_params=pltpu.CompilerParams(
            dimension_semantics=("parallel", "arbitrary")),
    )(adj, m)


# ----------------------------------------------------------------------------
# kernel 4: tiled decoder   out[i, j] = sigmoid(Z_aug[i] @ Wp_aug[:, j])
#           (rank-2 sensitive term + bias folded into Z_aug/Wp_aug)
# ----------------------------------------------------------------------------
def _decoder_kernel(z_ref, wp_ref, o_ref):
    logits = jnp.dot(z_ref[...], wp_ref[...], preferred_element_type=jnp.float32)
    o_ref[...] = jax.nn.sigmoid(logits).astype(o_ref.dtype)


def _decode(z_aug, wp_aug, *, tm, tn, out_dtype):
    n_rows, ha = z_aug.shape
    n_cols = wp_aug.shape[1]
    return pl.pallas_call(
        _decoder_kernel,
        out_shape=jax.ShapeDtypeStruct((n_rows, n_cols), out_dtype),
        grid=(n_rows // tm, n_cols // tn),
        in_specs=[
            pl.BlockSpec((tm, ha), lambda i, j: (i, 0)),
            pl.BlockSpec((ha, tn), lambda i, j: (0, j)),   # lane-dense Wp columns
        ],
        out_specs=pl.BlockSpec((tm, tn), lambda i, j: (i, j)),   # lane-dense output
        compiler_params=pltpu.CompilerParams(
            dimension_semantics=("parallel", "parallel")),       # megacore on v7x
    )(z_aug, wp_aug)


# ----------------------------------------------------------------------------
# forward wrapper
# ----------------------------------------------------------------------------
def cfgt_forward(X, adj, params, sen_idx, *, use_bf16=False, out_dtype=jnp.float32,
                 row_tile=512, k_tile=1024, dec_row_tile=512, dec_col_tile=1024):
    """X: (N, D) f32, adj: (N, N) f32 dense. Returns A_pred (N, N) in out_dtype."""
    N, D = X.shape
    f32 = jnp.float32
    compute_dtype = jnp.bfloat16 if use_bf16 else f32

    # ---- glue (O(N*D)): sensitive column, masked features, padding ---------
    S = X[:, sen_idx].reshape(N, 1).astype(f32)
    X_ns = X.at[:, sen_idx].set(0.0)

    Np = _round_up(N, 128)
    pad = Np - N
    if pad:
        X_ns = jnp.pad(X_ns, ((0, pad), (0, 0)))
        S_p = jnp.pad(S, ((0, pad), (0, 0)))
        adj_p = jnp.pad(adj, ((0, pad), (0, pad)))
    else:
        S_p, adj_p = S, adj

    # adj is binary -> bf16 is exact; halves the dominant HBM stream on all chips.
    adj_bf16 = adj_p.astype(jnp.bfloat16)

    tm = _pick_tile(Np, row_tile, min_steps=2)     # row ("parallel") tile
    tk = _pick_tile(Np, k_tile)                    # adj-column (reduction) tile

    # ---- GCN encoder, row- and K-tiled --------------------------------------
    xw1 = _feature_transform(X_ns.astype(compute_dtype),
                             params["w1"].astype(compute_dtype),
                             tm=tm, out_dtype=compute_dtype)
    # hw2 = relu(adj @ xw1) @ W2   (fused: one launch, no (N,H) hidden round-trip)
    hw2 = _propagate_fused(adj_bf16, xw1, params["w2"].astype(compute_dtype),
                           tm=tm, tk=tk,
                           compute_dtype=compute_dtype, out_dtype=compute_dtype)
    z = _propagate(adj_bf16, hw2, tm=tm, tk=tk,
                   compute_dtype=compute_dtype, out_dtype=compute_dtype)

    # ---- fold rank-2 sensitive term + bias into the decoder matmul ----------
    sf_w = params["sf"][0]
    sf_b = params["sf"][1]
    srf = S_p * sf_w + sf_b                        # (Np, 1)
    srcf = (1.0 - S_p) * sf_w + sf_b               # (Np, 1)
    H = params["w2"].shape[1]
    Ha = _round_up(H + 3, 64)                      # pad contraction dim (MXU-friendly)
    z_aug = jnp.concatenate(
        [z.astype(f32), 0.5 * srf, 0.5 * srcf, jnp.ones((Np, 1), f32),
         jnp.zeros((Np, Ha - (H + 3)), f32)], axis=1).astype(compute_dtype)
    bp = params["bp"].reshape(1, -1)
    if pad:
        wp_p = jnp.pad(params["wp"], ((0, 0), (0, pad)))
        bp_p = jnp.pad(bp, ((0, 0), (0, pad)))
    else:
        wp_p, bp_p = params["wp"], bp
    wp_aug = jnp.concatenate(
        [wp_p, srf.T, srcf.T, bp_p, jnp.zeros((Ha - (H + 3), Np), f32)],
        axis=0).astype(compute_dtype)

    # ---- tiled decoder over the (Np, Np) output ------------------------------
    tmd = _pick_tile(Np, dec_row_tile, min_steps=2)
    tnd = _pick_tile(Np, dec_col_tile, min_steps=2)
    a_pred = _decode(z_aug, wp_aug, tm=tmd, tn=tnd, out_dtype=out_dtype)
    if pad:
        a_pred = a_pred[:N, :N]
    return a_pred


# ----------------------------------------------------------------------------
# references
# ----------------------------------------------------------------------------
def cfgt_reference(X, adj, params, sen_idx):
    """Pure-JAX f32 reference mirroring the PyTorch forward."""
    N = X.shape[0]
    S = X[:, sen_idx].reshape(N, 1)
    X_ns = X.at[:, sen_idx].set(0.0)
    hidden = jax.nn.relu(adj @ (X_ns @ params["w1"]))
    z = adj @ (hidden @ params["w2"])
    logits = z @ params["wp"] + params["bp"]
    sf_w, sf_b = params["sf"][0], params["sf"][1]
    srf = S * sf_w + sf_b
    srcf = (1.0 - S) * sf_w + sf_b
    s_match = (srf @ srf.T + srcf @ srcf.T) / 2.0
    return jax.nn.sigmoid(logits + s_match)


def cfgt_reference_mxu(X, adj, params, sen_idx, mxu_dtype):
    """Reference mirroring the kernel dataflow (for the reduced-precision path):
    bf16 adj stream, fused hidden->W2, rank-2 term + bias folded into the dot."""
    N = X.shape[0]
    f32 = jnp.float32
    S = X[:, sen_idx].reshape(N, 1).astype(f32)
    X_ns = X.at[:, sen_idx].set(0.0)
    adj_c = adj.astype(mxu_dtype)   # binary -> exact
    dot = lambda a, b: jnp.dot(a.astype(mxu_dtype), b.astype(mxu_dtype),
                               preferred_element_type=f32)
    xw1 = dot(X_ns, params["w1"]).astype(mxu_dtype)
    hidden = jnp.maximum(jnp.dot(adj_c, xw1, preferred_element_type=f32), 0.0)
    hw2 = dot(hidden.astype(mxu_dtype), params["w2"]).astype(mxu_dtype)
    z = jnp.dot(adj_c, hw2, preferred_element_type=f32).astype(mxu_dtype)
    sf_w, sf_b = params["sf"][0], params["sf"][1]
    srf = S * sf_w + sf_b
    srcf = (1.0 - S) * sf_w + sf_b
    H = params["w2"].shape[1]
    Ha = ((H + 3 + 63) // 64) * 64
    z_aug = jnp.concatenate(
        [z.astype(f32), 0.5 * srf, 0.5 * srcf, jnp.ones((N, 1), f32),
         jnp.zeros((N, Ha - (H + 3)), f32)], axis=1)
    wp_aug = jnp.concatenate(
        [params["wp"], srf.T, srcf.T, params["bp"].reshape(1, -1),
         jnp.zeros((Ha - (H + 3), N), f32)], axis=0)
    logits = dot(z_aug, wp_aug)
    return jax.nn.sigmoid(logits)


# ----------------------------------------------------------------------------
# parameter init (mirrors the PyTorch module's init distributions)
# ----------------------------------------------------------------------------
def init_params(key, input_dim, h_dim, n_nodes):
    k1, k2, k3, k4, k5, k6 = jax.random.split(key, 6)

    def glorot(k, fan_in, fan_out):
        r = np.sqrt(6.0 / (fan_in + fan_out))
        return jax.random.uniform(k, (fan_in, fan_out), jnp.float32, -r, r)

    bnd_p = 1.0 / np.sqrt(h_dim)     # nn.Linear default ~ U(-1/sqrt(fan_in), .)
    bnd_s = 1.0
    return {
        "w1": glorot(k1, input_dim, h_dim),                               # base_gcn.weight
        "w2": glorot(k2, h_dim, h_dim),                                   # gcn_mean.weight
        "wp": jax.random.uniform(k3, (h_dim, n_nodes), jnp.float32,       # pred_a weight^T
                                 -bnd_p, bnd_p),
        "bp": jax.random.uniform(k4, (1, n_nodes), jnp.float32,           # pred_a bias
                                 -bnd_p, bnd_p),
        "sf": jnp.stack([                                                 # sf Linear(1,1): [w, b]
            jax.random.uniform(k5, (), jnp.float32, -bnd_s, bnd_s),
            jax.random.uniform(k6, (), jnp.float32, -bnd_s, bnd_s),
        ]).astype(jnp.float32),
    }


if __name__ == "__main__":
    N, D, H = 256, 16, 32    # nodes, input_dim, h_dim (small; 2x2 decoder grid, 2x1 prop grid)
    sen_idx = 1

    key = jax.random.PRNGKey(0)
    kx, ka, kp = jax.random.split(key, 3)

    X = jax.random.normal(kx, (N, D), jnp.float32)
    # deterministic ~10%-dense binary adjacency (dense stand-in for sparse adj)
    adj = (jax.random.uniform(ka, (N, N), jnp.float32) > 0.9).astype(jnp.float32)
    params = init_params(kp, D, H, N)

    # f32 path: adj streamed in bf16 (exact), everything else f32 -> matches the
    # PyTorch-math reference tightly.
    A_f32 = jax.block_until_ready(
        cfgt_forward(X, adj, params, sen_idx, use_bf16=False))
    A_ref = cfgt_reference(X, adj, params, sen_idx)
    np.testing.assert_allclose(np.asarray(A_f32), np.asarray(A_ref),
                               rtol=1e-5, atol=1e-5)

    # bf16-MXU path (weights/activations rounded; fairness term folded in bf16),
    # compared against a reference mirroring the same rounding/dataflow.
    A_bf16 = jax.block_until_ready(
        cfgt_forward(X, adj, params, sen_idx, use_bf16=True))
    A_ref_bf16 = cfgt_reference_mxu(X, adj, params, sen_idx, jnp.bfloat16)
    np.testing.assert_allclose(np.asarray(A_bf16), np.asarray(A_ref_bf16),
                               rtol=0.0, atol=2e-2)

    print("KERNEL_OK")
</pallas_src>

<mosaic_0001>
module attributes {stable_mosaic.version = 11 : i64} {
  func.func @_xw_kernel(%arg0: i32, %arg1: memref<128x16xf32, #tpu.memory_space<vmem>>, %arg2: memref<16x32xf32, #tpu.memory_space<vmem>>, %arg3: memref<128x32xf32, #tpu.memory_space<vmem>>) attributes {dimension_semantics = [#tpu.dimension_semantics<parallel>], iteration_bounds = array<i64: 2>, scalar_prefetch = 0 : i64, scratch_operands = 0 : i64, tpu.core_type = #tpu.core_type<tc>, window_params = [{transform_indices = @transform_0, window_bounds = array<i64: 128, 16>}, {pipeline_mode = #tpu.pipeline_mode<synchronous>, transform_indices = @transform_1, window_bounds = array<i64: 16, 32>}, {transform_indices = @transform_2, window_bounds = array<i64: 128, 32>}]} {
    %c0 = arith.constant 0 : index
    %c0_0 = arith.constant 0 : index
    %0 = vector.load %arg1[%c0, %c0_0] : memref<128x16xf32, #tpu.memory_space<vmem>>, vector<128x16xf32>
    %c0_1 = arith.constant 0 : index
    %c0_2 = arith.constant 0 : index
    %1 = vector.load %arg2[%c0_1, %c0_2] : memref<16x32xf32, #tpu.memory_space<vmem>>, vector<16x32xf32>
    %cst = arith.constant dense<0.000000e+00> : vector<128x32xf32>
    %2 = tpu.matmul %0, %1, %cst {dimension_numbers = #tpu.dot_dimension_numbers<[1], [0], [0], [1], [0, 0, 1, 1], [], []>} : vector<128x16xf32>, vector<16x32xf32>, vector<128x32xf32> -> vector<128x32xf32>
    %c0_3 = arith.constant 0 : index
    %c0_4 = arith.constant 0 : index
    %3 = vector.load %arg3[%c0_3, %c0_4] : memref<128x32xf32, #tpu.memory_space<vmem>>, vector<128x32xf32>
    tpu.vector_store %arg3[%c0_3, %c0_4], %2 {strides = array<i32>} : memref<128x32xf32, #tpu.memory_space<vmem>>, vector<128x32xf32>,
    return
  }
  func.func @transform_0(%arg0: i32) -> (i32, i32) {
    %c0_i32 = arith.constant 0 : i32
    %c0_i32_0 = arith.constant 0 : i32
    return %arg0, %c0_i32 : i32, i32
  }
  func.func @transform_1(%arg0: i32) -> (i32, i32) {
    %c0_i32 = arith.constant 0 : i32
    %c0_i32_0 = arith.constant 0 : i32
    %c0_i32_1 = arith.constant 0 : i32
    return %c0_i32, %c0_i32_0 : i32, i32
  }
  func.func @transform_2(%arg0: i32) -> (i32, i32) {
    %c0_i32 = arith.constant 0 : i32
    %c0_i32_0 = arith.constant 0 : i32
    return %arg0, %c0_i32 : i32, i32
  }
}

</mosaic_0001>

<bundles_post_ra>
// kernel: tpu_custom_call.1
= control target key start
LH: loop header
LB: loop body
LE: loop exit
PB: predicated region body
PF: predicated region fallthrough
CT: control target
= control target key end

     0   :  { %s542_s9 = smov 0   ;;  %s622_s0 = inlined_call_operand.vmem [shape: f32[256,16], index: 0, kind: input, shape index: {}]   ;;  %s623_s1 = inlined_call_operand.vmem [shape: f32[16,32], index: 1, kind: input, shape index: {}]   ;;  %s624_s2 = inlined_call_operand.vmem [shape: f32[256,32], index: 2, kind: output, shape index: {}]  }
   0x1 LB: > { %s432_s10 = sadd.s32 4294967295, %s525_s9   ;;  %p436_p0 = scmp.ge.s32.totalorder %s525_s9, 1  ;;  %s525_s9 = sphi %s542_s9, %s12_s9  }
   0x2   : > { %p113_p1 = scmp.lt.s32.totalorder %s525_s9, 3 }
   0x4   : > { %p114_p2 = pnand %p436_p0, %p113_p1 }
   0x5   : > { %v163_v0 = vld [vmem:[%s623_s1] sm:$0xff] (!%p114_p2)  ;;  %v164_v1 = vld [vmem:[%s623_s1 + $0x8] sm:$0xff] (!%p114_p2)  ;;  %s437_s15 = sshll.u32 (!%p114_p2), %s432_s10, 4  ;;  %vm165_vm0 = vcmask (!%p114_p2), 130048   ;;  %vm359_vm1 = vcmask (!%p114_p2), 261120  }
   0x6   : > { %117 = sbr.rel (%p114_p2) target bundleno = 245 (0xf5), region = 28  ;;  %v505_v2 = vpack.c.bf16 (!%p114_p2), %v164_v1, %v163_v0  ;;  %p136_p3 = scmp.lt.s32.totalorder (!%p114_p2), %s437_s15, 31 }
   0x8   : > { %506 = vmatprep.subr.bf16.mxu0 (!%p114_p2), %v505_v2  ;;  %509 = vmatprep.subr.bf16.mxu1 (!%p114_p2), %v505_v2 }
   0x9   : > { %508 = vmatpush3.bf16.msra.mxu0 (!%p114_p2), %v505_v2  ;;  %510 = vmatpush3.bf16.msra.mxu1 (!%p114_p2), %v505_v2 }
   0xd   : > { %s626_s15 = smov (!%p136_p3, %s437_s15), 31 }
   0xe   : > { %s438_s16 = sshll.u32 %s626_s15, 3 }
   0xf   : > { %s139_s19 = scalar_lea.vmem %s622_s0, %s438_s16  ;;  %s585_s22 = scalar_lea.vmem %s624_s2, %s438_s16 }
  0x10   : > { %v147_v3 = vld [vmem:[%s139_s19] sm:$0xff]  ;;  %v148_v5 = vld [vmem:[%s139_s19 + $0x8] sm:$0xff]  ;;  %v149_v7 = vld [vmem:[%s139_s19 + $0x10] sm:$0xff] }
  0x11   : > { %v155_v4 = vld [vmem:[%s139_s19 + $0x40] sm:$0xff]  ;;  %481 = vmatprep.mubr.msk.f32.mxu0 %vm165_vm0, %v147_v3  ;;  %v156_v6 = vld [vmem:[%s139_s19 + $0x48] sm:$0xff]  ;;  %v157_v8 = vld [vmem:[%s139_s19 + $0x50] sm:$0xff] }
  0x12   : > { %493 = vmatprep.mubr.msk.f32.mxu1 %vm165_vm0, %v155_v4  ;;  %482 = vmatmul.mubr.msk.f32.vlgmr.msra.gmra.mrb[0].mxu0 %vm165_vm0, %v148_v5  ;;  %v150_v9 = vld [vmem:[%s139_s19 + $0x18] sm:$0xff]  ;;  %v151_v11 = vld [vmem:[%s139_s19 + $0x20] sm:$0xff]  ;;  %v152_v13 = vld [vmem:[%s139_s19 + $0x28] sm:$0xff] }
  0x13   : > { %494 = vmatmul.mubr.msk.f32.vlgmr.msra.gmra.mrb[0].mxu1 %vm165_vm0, %v156_v6  ;;  %484 = vmatprep.mubr.msk.f32.mxu0 %vm165_vm0, %v149_v7  ;;  %v158_v10 = vld [vmem:[%s139_s19 + $0x58] sm:$0xff]  ;;  %v159_v12 = vld [vmem:[%s139_s19 + $0x60] sm:$0xff]  ;;  %v160_v14 = vld [vmem:[%s139_s19 + $0x68] sm:$0xff] }
  0x14   : > { %496 = vmatprep.mubr.msk.f32.mxu1 %vm165_vm0, %v157_v8  ;;  %v153_v15 = vld [vmem:[%s139_s19 + $0x30] sm:$0xff]  ;;  %v154_v17 = vld [vmem:[%s139_s19 + $0x38] sm:$0xff] }
  0x15   : > { %v161_v16 = vld [vmem:[%s139_s19 + $0x70] sm:$0xff]  ;;  %v162_v18 = vld [vmem:[%s139_s19 + $0x78] sm:$0xff] }
  0x16   : > { %485 = vmatmul.mubr.msk.f32.gmra.mrb[2].mxu0 %vm165_vm0, %v150_v9 }
  0x17   : > { %497 = vmatmul.mubr.msk.f32.gmra.mrb[2].mxu1 %vm165_vm0, %v158_v10  ;;  %487 = vmatprep.mubr.msk.f32.mxu0 %vm165_vm0, %v151_v11 }
  0x18   : > { %499 = vmatprep.mubr.msk.f32.mxu1 %vm165_vm0, %v159_v12 }
  0x1a   : > { %488 = vmatmul.mubr.msk.f32.gmra.mrb[4].mxu0 %vm165_vm0, %v152_v13 }
  0x1b   : > { %500 = vmatmul.mubr.msk.f32.gmra.mrb[4].mxu1 %vm165_vm0, %v160_v14  ;;  %490 = vmatprep.mubr.msk.f32.mxu0 %vm165_vm0, %v153_v15 }
  0x1c   : > { %502 = vmatprep.mubr.msk.f32.mxu1 %vm165_vm0, %v161_v16 }
  0x1e   : > { %491 = vmatmul.mubr.msk.f32.gmra.mrb[6].mxu0 %vm165_vm0, %v154_v17 }
  0x1f   : > { %503 = vmatmul.mubr.msk.f32.gmra.mrb[6].mxu1 %vm165_vm0, %v162_v18 }
  0xe5   : > { %v483_v19 = vpop.f32.mrb[0].mxu0 }
  0xe6   : > { %v495_v20 = vpop.f32.mrb[0].mxu1  ;;  %361 = vst.msk [vmem:[%s585_s22 + $0x8] sm:$0xff] %vm359_vm1, %v483_v19  ;;  %v280_v21 = vpop.f32.mrb[1].mxu0 }
  0xe7   : > { %369 = vst.msk [vmem:[%s585_s22 + $0x48] sm:$0xff] %vm359_vm1, %v495_v20  ;;  %v320_v22 = vpop.f32.mrb[1].mxu1  ;;  %360 = vst.msk [vmem:[%s585_s22] sm:$0xff] %vm359_vm1, %v280_v21 }
  0xe8   : > { %368 = vst.msk [vmem:[%s585_s22 + $0x40] sm:$0xff] %vm359_vm1, %v320_v22 }
  0xe9   : > { %v486_v23 = vpop.f32.mrb[2].mxu0 }
  0xea   : > { %v498_v24 = vpop.f32.mrb[2].mxu1  ;;  %363 = vst.msk [vmem:[%s585_s22 + $0x18] sm:$0xff] %vm359_vm1, %v486_v23  ;;  %v290_v25 = vpop.f32.mrb[3].mxu0 }
  0xeb   : > { %371 = vst.msk [vmem:[%s585_s22 + $0x58] sm:$0xff] %vm359_vm1, %v498_v24  ;;  %v330_v26 = vpop.f32.mrb[3].mxu1  ;;  %362 = vst.msk [vmem:[%s585_s22 + $0x10] sm:$0xff] %vm359_vm1, %v290_v25 }
  0xec   : > { %370 = vst.msk [vmem:[%s585_s22 + $0x50] sm:$0xff] %vm359_vm1, %v330_v26 }
  0xed   : > { %v489_v27 = vpop.f32.mrb[4].mxu0 }
  0xee   : > { %v501_v28 = vpop.f32.mrb[4].mxu1  ;;  %365 = vst.msk [vmem:[%s585_s22 + $0x28] sm:$0xff] %vm359_vm1, %v489_v27  ;;  %v300_v29 = vpop.f32.mrb[5].mxu0 }
  0xef   : > { %373 = vst.msk [vmem:[%s585_s22 + $0x68] sm:$0xff] %vm359_vm1, %v501_v28  ;;  %v340_v30 = vpop.f32.mrb[5].mxu1  ;;  %364 = vst.msk [vmem:[%s585_s22 + $0x20] sm:$0xff] %vm359_vm1, %v300_v29 }
  0xf0   : > { %372 = vst.msk [vmem:[%s585_s22 + $0x60] sm:$0xff] %vm359_vm1, %v340_v30 }
  0xf1   : > { %v492_v31 = vpop.f32.mrb[6].mxu0 }
  0xf2   : > { %v504_v32 = vpop.f32.mrb[6].mxu1  ;;  %367 = vst.msk [vmem:[%s585_s22 + $0x38] sm:$0xff] %vm359_vm1, %v492_v31  ;;  %v310_v33 = vpop.f32.mrb[7].mxu0 }
  0xf3   : > { %375 = vst.msk [vmem:[%s585_s22 + $0x78] sm:$0xff] %vm359_vm1, %v504_v32  ;;  %v350_v34 = vpop.f32.mrb[7].mxu1  ;;  %366 = vst.msk [vmem:[%s585_s22 + $0x30] sm:$0xff] %vm359_vm1, %v310_v33 }
  0xf4   : > { %374 = vst.msk [vmem:[%s585_s22 + $0x70] sm:$0xff] %vm359_vm1, %v350_v34 }
  0xf5 PF: > { %s12_s9 = sadd.s32 1, %s525_s9  }
  0xf6   : > { %p9_p4 = scmp.ge.s32.totalorder %s12_s9, 4  }
  0xf8   :  { %11 = sbr.rel (!%p9_p4) target bundleno = 1 (0x1), region = 58 }

</bundles_post_ra>
